<compile_context>
chip_gen: v7x
topology: tpu7x:2x2x1
jax: 0.10.0
libtpu: 0.0.40
codegen_flags: <defaults>
</compile_context>

<pallas_src>
import functools

import numpy as np

import jax
import jax.numpy as jnp
from jax.experimental import pallas as pl
from jax.experimental.pallas import tpu as pltpu


_LANE = 128
_SUBLANE = 8
_BLOCK_DIAG_MAX_HIDDEN = 256  # MXU tile (v6e/v7x); beyond this, block-diag W1/W2
                              # wastes H x FLOPs and H^2*d_k^2 weight bytes.

# Resolved on first compile: does this JAX version accept pl.Buffered(1) specs?
_BUFFERED_WEIGHTS_OK = None


def _round_up(x, m):
    return ((x + m - 1) // m) * m


@functools.lru_cache(maxsize=None)
def _chip_info():
    """Best-effort chip query: (vmem_bytes_per_core, assume_two_tensorcores)."""
    try:
        info = pltpu.get_tpu_info()
        vmem = int(getattr(info, "vmem_capacity_bytes", 0)) or 64 * 1024 * 1024
    except Exception:  # noqa: BLE001 - conservative default if the query fails
        vmem = 64 * 1024 * 1024
    # v7x-class parts have <= 64 MiB VMEM per TensorCore and 2 TCs per chip;
    # v5e/v6e report 128 MiB and have a single TC.
    two_cores = vmem <= 80 * 1024 * 1024
    return vmem, two_cores


# ---------------------------------------------------------------------------
# Kernel
# ---------------------------------------------------------------------------
def _mha_kernel(q_ref, k_ref, v_ref, w1_ref, w2_ref, w0t_ref, b_ref, o_ref, *,
                num_heads, per_head, seq_len, session_len, compute_dtype):
    # q_ref/k_ref/v_ref: (G, S_pad, hidden)  - G batches, original layout.
    # block-diag mode : w1/w2 (hidden, hidden), w0t (hidden, H*L), bias (1, hidden)
    # per-head mode   : w1/w2 (d_k, d_k),       w0t (d_k, L),      bias (1, d_k)
    # o_ref           : (G, L, hidden)       - output in the final module layout.
    G, S_pad, hidden = q_ref.shape
    H = num_heads
    d_k = hidden // H
    L = session_len

    def mx(x):  # cast of MXU operands only; accumulation stays f32.
        return x.astype(compute_dtype)

    w1 = w1_ref[...]
    w2 = w2_ref[...]
    w0t = w0t_ref[...]
    bias = b_ref[...].astype(jnp.float32)

    def attend(q2, k2):
        # q2/k2: (G*S_pad, C) compute dtype -> softmax weights (G, S_pad, cols) f32.
        h = (jnp.dot(k2, w1, preferred_element_type=jnp.float32)
             + jnp.dot(q2, w2, preferred_element_type=jnp.float32)
             + bias)
        h = jnp.maximum(h, 0.0)
        alpha = jnp.dot(mx(h), w0t, preferred_element_type=jnp.float32)
        alpha = alpha.reshape(G, S_pad, alpha.shape[-1])
        if seq_len != S_pad:
            # Rows that only exist because S was padded to a multiple of 8 must
            # not contribute to the softmax-over-S denominator.
            row = jax.lax.broadcasted_iota(jnp.int32, alpha.shape, 1)
            alpha = jnp.where(row < seq_len, alpha, -1e9)
        m = jnp.max(alpha, axis=1, keepdims=True)
        e = jnp.exp(alpha - m)
        # Exact divide: this kernel is not VPU-bound, so the approximate EUP
        # reciprocal is not worth its ~1e-3 relative error.
        return e / jnp.sum(e, axis=1, keepdims=True)

    dn = (((1,), (1,)), ((0,), (0,)))  # contract the S axis, batch over G

    if per_head:
        # Heads share a single (d_k, d_k)/(L, d_k) weight set; head slices of
        # the hidden axis are lane-aligned because this path is only taken for
        # large d_k.  Avoids the H x FLOP / VMEM tax of block-diagonal weights.
        outs = []
        for hh in range(H):
            sl = slice(hh * d_k, (hh + 1) * d_k)
            q2 = mx(q_ref[:, :, sl].reshape(G * S_pad, d_k))
            k2 = mx(k_ref[:, :, sl].reshape(G * S_pad, d_k))
            p_h = attend(q2, k2)                                  # (G, S_pad, L)
            outs.append(jax.lax.dot_general(
                mx(p_h), v_ref[:, :, sl], dimension_numbers=dn,
                preferred_element_type=jnp.float32))              # (G, L, d_k)
        out = outs[0] if H == 1 else jnp.concatenate(outs, axis=-1)
    else:
        # Block-diagonal weights: all heads in one (G*S, hidden) slab of matmuls.
        q2 = mx(q_ref[...].reshape(G * S_pad, hidden))
        k2 = mx(k_ref[...].reshape(G * S_pad, hidden))
        p = attend(q2, k2)                                        # (G, S_pad, H*L)
        v = v_ref[...]
        if H == 1:
            out = jax.lax.dot_general(mx(p), v, dimension_numbers=dn,
                                      preferred_element_type=jnp.float32)
        else:
            outs = []
            for hh in range(H):
                p_h = p[:, :, hh * L:(hh + 1) * L]
                v_h = v[:, :, hh * d_k:(hh + 1) * d_k]
                outs.append(jax.lax.dot_general(
                    mx(p_h), v_h, dimension_numbers=dn,
                    preferred_element_type=jnp.float32))
            out = jnp.concatenate(outs, axis=-1)                  # (G, L, hidden)

    # One full-width store per step (per-head slice stores would be H masked
    # vst.msk writes at d_k-lane utilization).
    # TODO(synk): when hidden < 128 the store is still lane-masked; a fully
    # lane-dense (G, L*hidden) out block needs a lane-collapsing reshape.
    o_ref[...] = out.astype(o_ref.dtype)


# ---------------------------------------------------------------------------
# Parameter preparation (hoisted out of the per-call forward path)
# ---------------------------------------------------------------------------
def _block_diag(w, n):
    if n == 1:
        return w
    return jnp.kron(jnp.eye(n, dtype=w.dtype), w)


def prepare_attention_params(w0, w1, w2, bias, *, hidden_dim, num_heads=1,
                             compute_dtype=jnp.float32):
    """One-time weight prep: returns (w1_p, w2_p, w0t_p, bias_p).

    For small hidden the shared per-head weights are expanded block-diagonally
    so the kernel applies every head with a single matmul on the original
    (B, S, hidden) layout; for large hidden the raw shared (d_k, d_k) weights
    are returned and the kernel loops over lane-aligned head slices.
    """
    H = num_heads
    d_k = hidden_dim // H
    cdt = np.dtype(compute_dtype)
    if H > 1 and hidden_dim > _BLOCK_DIAG_MAX_HIDDEN:
        w1_p = w1.astype(cdt)
        w2_p = w2.astype(cdt)
        w0t_p = w0.T.astype(cdt)
        bias_p = bias.reshape(1, d_k).astype(jnp.float32)
    else:
        w1_p = _block_diag(w1, H).astype(cdt)                     # (hidden, hidden)
        w2_p = _block_diag(w2, H).astype(cdt)                     # (hidden, hidden)
        w0t_p = _block_diag(w0.T, H).astype(cdt)                  # (hidden, H*L)
        bias_p = jnp.tile(bias.reshape(1, d_k), (1, H)).astype(jnp.float32)
    return w1_p, w2_p, w0t_p, bias_p


# ---------------------------------------------------------------------------
# Scheduling (VMEM-aware batch-chunk size)
# ---------------------------------------------------------------------------
def _choose_schedule(B, S_pad, hidden, L, H, per_head, in_isize, out_isize,
                     w_isize, buffered_weights):
    vmem_bytes, two_cores = _chip_info()
    big_vmem = vmem_bytes >= 100 * 1024 * 1024       # v5e / v6e class (128 MiB)
    budget = (48 if big_vmem else 20) * 1024 * 1024  # conservative on v7x/unknown

    d_k = hidden // H
    wd = d_k if per_head else hidden
    w0t_cols = L if per_head else H * L
    wbuf = 1 if buffered_weights else 2
    hid128 = _round_up(hidden, _LANE)
    L8 = _round_up(L, _SUBLANE)
    a128 = _round_up(L if per_head else H * L, _LANE)

    # Padded-tile footprint of the loop-invariant weight/bias blocks.
    fixed = wbuf * (2 * _round_up(wd, _SUBLANE) * _round_up(wd, _LANE) * w_isize
                    + _round_up(wd, _SUBLANE) * _round_up(w0t_cols, _LANE) * w_isize
                    + _SUBLANE * _round_up(wd, _LANE) * 4)

    # Per-batch footprint of one grid step: q/k/v and out blocks are
    # double-buffered by the pipeline; plus the in-kernel f32 temporaries.
    per_batch = (2 * 3 * S_pad * hid128 * in_isize     # q/k/v blocks (x2 buffers)
                 + 2 * L8 * hid128 * out_isize         # out block     (x2 buffers)
                 + 2 * S_pad * hid128 * 4              # h + one temporary (f32)
                 + 3 * S_pad * a128 * 4                # alpha / e / p (f32)
                 + L8 * hid128 * 4)                    # out value before store (f32)

    cap = max(1, max(budget - fixed, per_batch) // per_batch)

    if two_cores and B > 1:
        # v7x-class: keep >= 2 grid steps so both TensorCores get work.
        G = int(min(cap, -(-B // 2)))
    else:
        # Single TensorCore: the biggest batch-chunk the VMEM budget allows.
        G = int(min(cap, B))
    num_chunks = -(-B // G)
    if two_cores and num_chunks > 1 and num_chunks % 2 == 1:
        num_chunks += 1  # even chunk count -> no idle core on the tail wave

    # Raise the scoped VMEM limit only when the chosen blocks actually need it
    # (v5e's default scoped limit is 16 MiB); cap it per chip class.
    est = fixed + G * per_batch + 2 * 1024 * 1024
    vmem_limit = None
    if est > 12 * 1024 * 1024:
        ceiling = (100 if big_vmem else 32) * 1024 * 1024
        vmem_limit = int(min(max(est + 8 * 1024 * 1024, 32 * 1024 * 1024), ceiling))
    return G, num_chunks, vmem_limit


# ---------------------------------------------------------------------------
# pallas_call builder
# ---------------------------------------------------------------------------
@functools.lru_cache(maxsize=None)
def _build_forward(*, B, S, hidden, L, H, per_head, in_dtype, compute_dtype,
                   buffered_weights):
    in_dtype = np.dtype(in_dtype)
    compute_dtype = np.dtype(compute_dtype)
    out_dtype = compute_dtype
    d_k = hidden // H
    wd = d_k if per_head else hidden
    w0t_cols = L if per_head else H * L
    S_pad = _round_up(S, _SUBLANE)

    G, num_chunks, vmem_limit = _choose_schedule(
        B, S_pad, hidden, L, H, per_head,
        compute_dtype.itemsize, out_dtype.itemsize, compute_dtype.itemsize,
        buffered_weights)
    B_pad = num_chunks * G

    kernel = functools.partial(
        _mha_kernel, num_heads=H, per_head=per_head, seq_len=S,
        session_len=L, compute_dtype=compute_dtype)

    def _const_spec(shape):
        index_map = lambda i: (0,) * len(shape)  # noqa: E731
        if buffered_weights:
            # Loop-invariant block: a second pipeline buffer is pure VMEM waste.
            return pl.BlockSpec(shape, index_map, pipeline_mode=pl.Buffered(1))
        return pl.BlockSpec(shape, index_map)

    # Advisory cost estimate so XLA schedules surrounding ops around the call.
    if per_head:
        flops = (4 * B_pad * S_pad * H * d_k * d_k
                 + 2 * B_pad * S_pad * H * d_k * L
                 + 2 * B_pad * L * S_pad * hidden)
    else:
        flops = (4 * B_pad * S_pad * hidden * hidden
                 + 2 * B_pad * S_pad * hidden * H * L
                 + 2 * B_pad * L * S_pad * hidden)
    weight_bytes = (2 * wd * wd + wd * w0t_cols) * compute_dtype.itemsize + wd * 4
    bytes_accessed = (3 * B_pad * S_pad * hidden * compute_dtype.itemsize
                      + B_pad * L * hidden * out_dtype.itemsize + weight_bytes)
    cost = pl.CostEstimate(flops=int(flops),
                           transcendentals=int(B_pad * S_pad * H * L),
                           bytes_accessed=int(bytes_accessed))

    call = pl.pallas_call(
        kernel,
        out_shape=jax.ShapeDtypeStruct((B_pad, L, hidden), out_dtype),
        grid=(num_chunks,),
        in_specs=[
            pl.BlockSpec((G, S_pad, hidden), lambda i: (i, 0, 0)),   # q
            pl.BlockSpec((G, S_pad, hidden), lambda i: (i, 0, 0)),   # k
            pl.BlockSpec((G, S_pad, hidden), lambda i: (i, 0, 0)),   # v
            _const_spec((wd, wd)),                                   # W1
            _const_spec((wd, wd)),                                   # W2
            _const_spec((wd, w0t_cols)),                             # W0^T
            _const_spec((1, wd)),                                    # bias row
        ],
        out_specs=pl.BlockSpec((G, L, hidden), lambda i: (i, 0, 0)),
        compiler_params=pltpu.CompilerParams(
            dimension_semantics=("parallel",),
            vmem_limit_bytes=vmem_limit),
        cost_estimate=cost,
    )

    @jax.jit
    def forward(q, k, v, w1_p, w2_p, w0t_p, bias_p):
        # Wrapper-side dtype cast: the pallas DMA then moves the narrow dtype.
        q = q.astype(compute_dtype)
        k = k.astype(compute_dtype)
        v = v.astype(compute_dtype)
        if B_pad != B or S_pad != S:
            pad = ((0, B_pad - B), (0, S_pad - S), (0, 0))
            q = jnp.pad(q, pad)
            k = jnp.pad(k, pad)
            v = jnp.pad(v, pad)
        out = call(q, k, v, w1_p, w2_p, w0t_p, bias_p)
        if B_pad != B:
            out = out[:B]
        return out.astype(in_dtype)

    return forward


# ---------------------------------------------------------------------------
# Public wrapper
# ---------------------------------------------------------------------------
def multi_headed_attention(query, key, value, w0, w1, w2, bias, *,
                           num_heads=1, use_bf16_mxu=False, prepared_params=None):
    """Forward of MultiHeadedAttention with linear=False, mask=None, dropout=0."""
    global _BUFFERED_WEIGHTS_OK
    B, S, hidden = query.shape
    assert hidden % num_heads == 0
    L = w0.shape[0]  # session_len
    in_dtype = np.dtype(query.dtype)
    compute_dtype = np.dtype(jnp.bfloat16) if use_bf16_mxu else in_dtype

    if prepared_params is None:
        prepared_params = prepare_attention_params(
            w0, w1, w2, bias, hidden_dim=hidden, num_heads=num_heads,
            compute_dtype=compute_dtype)
    w1_p, w2_p, w0t_p, bias_p = prepared_params
    per_head = num_heads > 1 and w1_p.shape[0] != hidden

    use_buffered_first = _BUFFERED_WEIGHTS_OK is not False
    attempts = (True, False) if use_buffered_first else (False,)
    last_err = None
    for buffered in attempts:
        try:
            fwd = _build_forward(B=B, S=S, hidden=hidden, L=L, H=num_heads,
                                 per_head=per_head, in_dtype=in_dtype,
                                 compute_dtype=compute_dtype,
                                 buffered_weights=buffered)
            out = fwd(query, key, value, w1_p, w2_p, w0t_p, bias_p)
        except Exception as err:  # noqa: BLE001 - fall back to plain specs
            last_err = err
            continue
        if buffered:
            _BUFFERED_WEIGHTS_OK = True
        elif use_buffered_first:
            _BUFFERED_WEIGHTS_OK = False
        return out
    raise last_err


# ---------------------------------------------------------------------------
# Reference + tests
# ---------------------------------------------------------------------------
def _reference(query, key, value, w0, w1, w2, bias, num_heads=1):
    """Pure-JAX reference replicating the PyTorch forward (linear=False)."""
    B, S, hidden = query.shape
    d_k = hidden // num_heads

    def split(x):
        return x.reshape(B, S, num_heads, d_k).transpose(0, 2, 1, 3)

    q, k, v = split(query), split(key), split(value)          # (B, H, S, d_k)
    h = jax.nn.relu(k @ w1 + q @ w2 + bias)                   # (B, H, S, d_k)
    alpha = jax.nn.softmax(h @ w0.T, axis=-2)                 # (B, H, S, L)
    re = jnp.swapaxes(alpha, -1, -2) @ v                      # (B, H, L, d_k)
    return re.transpose(0, 2, 1, 3).reshape(B, -1, num_heads * d_k)


def _run_case(name, *, B, S, hidden, heads, session_len, use_bf16_mxu=False,
              atol=5e-3, rtol=5e-3, prepared=False, seed=0):
    d_k = hidden // heads
    keys = jax.random.split(jax.random.PRNGKey(seed), 6)
    query = jax.random.normal(keys[0], (B, S, hidden), dtype=jnp.float32)
    key_in = jax.random.normal(keys[1], (B, S, hidden), dtype=jnp.float32)
    value = jax.random.normal(keys[2], (B, S, hidden), dtype=jnp.float32)
    # Parameter init matching init.normal_(w, 0, 0.05); small nonzero bias.
    w0 = 0.05 * jax.random.normal(keys[3], (session_len, d_k), dtype=jnp.float32)
    w1 = 0.05 * jax.random.normal(keys[4], (d_k, d_k), dtype=jnp.float32)
    w2 = 0.05 * jax.random.normal(keys[5], (d_k, d_k), dtype=jnp.float32)
    bias = 0.01 * jnp.ones((d_k,), dtype=jnp.float32)

    params = None
    if prepared:  # demonstrate the hoisted, reusable parameter prep
        params = prepare_attention_params(w0, w1, w2, bias, hidden_dim=hidden,
                                          num_heads=heads,
                                          compute_dtype=jnp.float32)

    out = multi_headed_attention(query, key_in, value, w0, w1, w2, bias,
                                 num_heads=heads, use_bf16_mxu=use_bf16_mxu,
                                 prepared_params=params)
    out = jax.block_until_ready(out)

    ref = _reference(query, key_in, value, w0, w1, w2, bias, num_heads=heads)
    assert out.shape == (B, session_len, hidden), (name, out.shape)
    err = float(jnp.max(jnp.abs(out - ref)))
    assert jnp.allclose(out, ref, atol=atol, rtol=rtol), (name, err)
    return err


if __name__ == "__main__":
    # Shapes consistent with the module: hidden_dim=32, session_len=8, seq=8.
    _run_case("single_head_f32", B=2, S=8, hidden=32, heads=1, session_len=8,
              prepared=True)
    # Multi-head, small hidden -> block-diagonal weight path + batch padding.
    _run_case("multi_head_blockdiag", B=3, S=8, hidden=64, heads=2, session_len=8)
    # Multi-head, large hidden -> per-head path + padded-S softmax masking.
    _run_case("multi_head_per_head", B=2, S=10, hidden=512, heads=4,
              session_len=8, atol=2e-2, rtol=2e-2, seed=1)
    # bf16 MXU-input path (wrapper-side cast), loose tolerance.
    _run_case("single_head_bf16_mxu", B=2, S=8, hidden=32, heads=1,
              session_len=8, use_bf16_mxu=True, atol=5e-2, rtol=5e-2)
    print("KERNEL_OK")
</pallas_src>

<mosaic_0001>
module attributes {stable_mosaic.version = 11 : i64} {
  func.func @_mha_kernel(%arg0: i32, %arg1: memref<1x8x32xf32, #tpu.memory_space<vmem>>, %arg2: memref<1x8x32xf32, #tpu.memory_space<vmem>>, %arg3: memref<1x8x32xf32, #tpu.memory_space<vmem>>, %arg4: memref<32x32xf32, #tpu.memory_space<vmem>>, %arg5: memref<32x32xf32, #tpu.memory_space<vmem>>, %arg6: memref<32x8xf32, #tpu.memory_space<vmem>>, %arg7: memref<1x32xf32, #tpu.memory_space<vmem>>, %arg8: memref<1x8x32xf32, #tpu.memory_space<vmem>>) attributes {dimension_semantics = [#tpu.dimension_semantics<parallel>], iteration_bounds = array<i64: 2>, scalar_prefetch = 0 : i64, scratch_operands = 0 : i64, tpu.core_type = #tpu.core_type<tc>, window_params = [{transform_indices = @transform_0, window_bounds = array<i64: 1, 8, 32>}, {transform_indices = @transform_1, window_bounds = array<i64: 1, 8, 32>}, {transform_indices = @transform_2, window_bounds = array<i64: 1, 8, 32>}, {pipeline_mode = #tpu.pipeline_mode<synchronous>, transform_indices = @transform_3, window_bounds = array<i64: 32, 32>}, {pipeline_mode = #tpu.pipeline_mode<synchronous>, transform_indices = @transform_4, window_bounds = array<i64: 32, 32>}, {pipeline_mode = #tpu.pipeline_mode<synchronous>, transform_indices = @transform_5, window_bounds = array<i64: 32, 8>}, {pipeline_mode = #tpu.pipeline_mode<synchronous>, transform_indices = @transform_6, window_bounds = array<i64: 1, 32>}, {transform_indices = @transform_7, window_bounds = array<i64: 1, 8, 32>}]} {
    %c0 = arith.constant 0 : index
    %c0_0 = arith.constant 0 : index
    %0 = vector.load %arg4[%c0, %c0_0] : memref<32x32xf32, #tpu.memory_space<vmem>>, vector<32x32xf32>
    %c0_1 = arith.constant 0 : index
    %c0_2 = arith.constant 0 : index
    %1 = vector.load %arg5[%c0_1, %c0_2] : memref<32x32xf32, #tpu.memory_space<vmem>>, vector<32x32xf32>
    %c0_3 = arith.constant 0 : index
    %c0_4 = arith.constant 0 : index
    %2 = vector.load %arg6[%c0_3, %c0_4] : memref<32x8xf32, #tpu.memory_space<vmem>>, vector<32x8xf32>
    %c0_5 = arith.constant 0 : index
    %c0_6 = arith.constant 0 : index
    %3 = vector.load %arg7[%c0_5, %c0_6] : memref<1x32xf32, #tpu.memory_space<vmem>>, vector<1x32xf32>
    %c0_7 = arith.constant 0 : index
    %c0_8 = arith.constant 0 : index
    %c0_9 = arith.constant 0 : index
    %4 = vector.load %arg1[%c0_7, %c0_8, %c0_9] : memref<1x8x32xf32, #tpu.memory_space<vmem>>, vector<1x8x32xf32>
    %5 = vector.shape_cast %4 : vector<1x8x32xf32> to vector<8x32xf32>
    %c0_10 = arith.constant 0 : index
    %c0_11 = arith.constant 0 : index
    %c0_12 = arith.constant 0 : index
    %6 = vector.load %arg2[%c0_10, %c0_11, %c0_12] : memref<1x8x32xf32, #tpu.memory_space<vmem>>, vector<1x8x32xf32>
    %7 = vector.shape_cast %6 : vector<1x8x32xf32> to vector<8x32xf32>
    %cst = arith.constant dense<0.000000e+00> : vector<8x32xf32>
    %8 = tpu.matmul %7, %0, %cst {dimension_numbers = #tpu.dot_dimension_numbers<[1], [0], [0], [1], [0, 0, 1, 1], [], []>} : vector<8x32xf32>, vector<32x32xf32>, vector<8x32xf32> -> vector<8x32xf32>
    %cst_13 = arith.constant dense<0.000000e+00> : vector<8x32xf32>
    %9 = tpu.matmul %5, %1, %cst_13 {dimension_numbers = #tpu.dot_dimension_numbers<[1], [0], [0], [1], [0, 0, 1, 1], [], []>} : vector<8x32xf32>, vector<32x32xf32>, vector<8x32xf32> -> vector<8x32xf32>
    %10 = arith.addf %8, %9 : vector<8x32xf32>
    %11 = vector.broadcast %3 : vector<1x32xf32> to vector<8x32xf32>
    %12 = arith.addf %10, %11 : vector<8x32xf32>
    %cst_14 = arith.constant 0.000000e+00 : f32
    %13 = vector.broadcast %cst_14 : f32 to vector<8x32xf32>
    %14 = arith.maximumf %12, %13 : vector<8x32xf32>
    %cst_15 = arith.constant dense<0.000000e+00> : vector<8x8xf32>
    %15 = tpu.matmul %14, %2, %cst_15 {dimension_numbers = #tpu.dot_dimension_numbers<[1], [0], [0], [1], [0, 0, 1, 1], [], []>} : vector<8x32xf32>, vector<32x8xf32>, vector<8x8xf32> -> vector<8x8xf32>
    %16 = vector.shape_cast %15 : vector<8x8xf32> to vector<1x8x8xf32>
    %cst_16 = arith.constant dense<0xFF800000> : vector<1x8xf32>
    %17 = vector.multi_reduction <maximumf>, %16, %cst_16 [1] : vector<1x8x8xf32> to vector<1x8xf32>
    %18 = vector.shape_cast %17 : vector<1x8xf32> to vector<1x1x8xf32>
    %19 = vector.broadcast %18 : vector<1x1x8xf32> to vector<1x8x8xf32>
    %20 = arith.subf %16, %19 : vector<1x8x8xf32>
    %21 = math.exp %20 : vector<1x8x8xf32>
    %cst_17 = arith.constant dense<0.000000e+00> : vector<1x8xf32>
    %22 = vector.multi_reduction <add>, %21, %cst_17 [1] : vector<1x8x8xf32> to vector<1x8xf32>
    %23 = vector.shape_cast %22 : vector<1x8xf32> to vector<1x1x8xf32>
    %24 = vector.broadcast %23 : vector<1x1x8xf32> to vector<1x8x8xf32>
    %25 = arith.divf %21, %24 : vector<1x8x8xf32>
    %c0_18 = arith.constant 0 : index
    %c0_19 = arith.constant 0 : index
    %c0_20 = arith.constant 0 : index
    %26 = vector.load %arg3[%c0_18, %c0_19, %c0_20] : memref<1x8x32xf32, #tpu.memory_space<vmem>>, vector<1x8x32xf32>
    %cst_21 = arith.constant dense<0.000000e+00> : vector<1x8x32xf32>
    %27 = tpu.matmul %25, %26, %cst_21 {dimension_numbers = #tpu.dot_dimension_numbers<[1], [1], [2], [2], [0, 0, 0, 2, 1, 2], [0], [0]>} : vector<1x8x8xf32>, vector<1x8x32xf32>, vector<1x8x32xf32> -> vector<1x8x32xf32>
    %c0_22 = arith.constant 0 : index
    %c0_23 = arith.constant 0 : index
    %c0_24 = arith.constant 0 : index
    %28 = vector.load %arg8[%c0_22, %c0_23, %c0_24] : memref<1x8x32xf32, #tpu.memory_space<vmem>>, vector<1x8x32xf32>
    tpu.vector_store %arg8[%c0_22, %c0_23, %c0_24], %27 {strides = array<i32>} : memref<1x8x32xf32, #tpu.memory_space<vmem>>, vector<1x8x32xf32>,
    return
  }
  func.func @transform_0(%arg0: i32) -> (i32, i32, i32) {
    %c0_i32 = arith.constant 0 : i32
    %c0_i32_0 = arith.constant 0 : i32
    %c0_i32_1 = arith.constant 0 : i32
    return %arg0, %c0_i32, %c0_i32_0 : i32, i32, i32
  }
  func.func @transform_1(%arg0: i32) -> (i32, i32, i32) {
    %c0_i32 = arith.constant 0 : i32
    %c0_i32_0 = arith.constant 0 : i32
    %c0_i32_1 = arith.constant 0 : i32
    return %arg0, %c0_i32, %c0_i32_0 : i32, i32, i32
  }
  func.func @transform_2(%arg0: i32) -> (i32, i32, i32) {
    %c0_i32 = arith.constant 0 : i32
    %c0_i32_0 = arith.constant 0 : i32
    %c0_i32_1 = arith.constant 0 : i32
    return %arg0, %c0_i32, %c0_i32_0 : i32, i32, i32
  }
  func.func @transform_3(%arg0: i32) -> (i32, i32) {
    %c0_i32 = arith.constant 0 : i32
    %c0_i32_0 = arith.constant 0 : i32
    %c0_i32_1 = arith.constant 0 : i32
    return %c0_i32, %c0_i32_0 : i32, i32
  }
  func.func @transform_4(%arg0: i32) -> (i32, i32) {
    %c0_i32 = arith.constant 0 : i32
    %c0_i32_0 = arith.constant 0 : i32
    %c0_i32_1 = arith.constant 0 : i32
    return %c0_i32, %c0_i32_0 : i32, i32
  }
  func.func @transform_5(%arg0: i32) -> (i32, i32) {
    %c0_i32 = arith.constant 0 : i32
    %c0_i32_0 = arith.constant 0 : i32
    %c0_i32_1 = arith.constant 0 : i32
    return %c0_i32, %c0_i32_0 : i32, i32
  }
  func.func @transform_6(%arg0: i32) -> (i32, i32) {
    %c0_i32 = arith.constant 0 : i32
    %c0_i32_0 = arith.constant 0 : i32
    %c0_i32_1 = arith.constant 0 : i32
    return %c0_i32, %c0_i32_0 : i32, i32
  }
  func.func @transform_7(%arg0: i32) -> (i32, i32, i32) {
    %c0_i32 = arith.constant 0 : i32
    %c0_i32_0 = arith.constant 0 : i32
    %c0_i32_1 = arith.constant 0 : i32
    return %arg0, %c0_i32, %c0_i32_0 : i32, i32, i32
  }
}

module attributes {stable_mosaic.version = 11 : i64} {
  func.func @_mha_kernel(%arg0: i32, %arg1: memref<1x8x32xf32, #tpu.memory_space<vmem>>, %arg2: memref<1x8x32xf32, #tpu.memory_space<vmem>>, %arg3: memref<1x8x32xf32, #tpu.memory_space<vmem>>, %arg4: memref<32x32xf32, #tpu.memory_space<vmem>>, %arg5: memref<32x32xf32, #tpu.memory_space<vmem>>, %arg6: memref<32x8xf32, #tpu.memory_space<vmem>>, %arg7: memref<1x32xf32, #tpu.memory_space<vmem>>, %arg8: memref<1x8x32xf32, #tpu.memory_space<vmem>>) attributes {dimension_semantics = [#tpu.dimension_semantics<parallel>], iteration_bounds = array<i64: 2>, scalar_prefetch = 0 : i64, scratch_operands = 0 : i64, tpu.core_type = #tpu.core_type<tc>, window_params = [{transform_indices = @transform_0, window_bounds = array<i64: 1, 8, 32>}, {transform_indices = @transform_1, window_bounds = array<i64: 1, 8, 32>}, {transform_indices = @transform_2, window_bounds = array<i64: 1, 8, 32>}, {pipeline_mode = #tpu.pipeline_mode<synchronous>, transform_indices = @transform_3, window_bounds = array<i64: 32, 32>}, {pipeline_mode = #tpu.pipeline_mode<synchronous>, transform_indices = @transform_4, window_bounds = array<i64: 32, 32>}, {pipeline_mode = #tpu.pipeline_mode<synchronous>, transform_indices = @transform_5, window_bounds = array<i64: 32, 8>}, {pipeline_mode = #tpu.pipeline_mode<synchronous>, transform_indices = @transform_6, window_bounds = array<i64: 1, 32>}, {transform_indices = @transform_7, window_bounds = array<i64: 1, 8, 32>}]} {
    %c0 = arith.constant 0 : index
    %c0_0 = arith.constant 0 : index
    %0 = vector.load %arg4[%c0, %c0_0] : memref<32x32xf32, #tpu.memory_space<vmem>>, vector<32x32xf32>
    %c0_1 = arith.constant 0 : index
    %c0_2 = arith.constant 0 : index
    %1 = vector.load %arg5[%c0_1, %c0_2] : memref<32x32xf32, #tpu.memory_space<vmem>>, vector<32x32xf32>
    %c0_3 = arith.constant 0 : index
    %c0_4 = arith.constant 0 : index
    %2 = vector.load %arg6[%c0_3, %c0_4] : memref<32x8xf32, #tpu.memory_space<vmem>>, vector<32x8xf32>
    %c0_5 = arith.constant 0 : index
    %c0_6 = arith.constant 0 : index
    %3 = vector.load %arg7[%c0_5, %c0_6] : memref<1x32xf32, #tpu.memory_space<vmem>>, vector<1x32xf32>
    %c0_7 = arith.constant 0 : index
    %c0_8 = arith.constant 0 : index
    %c0_9 = arith.constant 0 : index
    %4 = vector.load %arg1[%c0_7, %c0_8, %c0_9] : memref<1x8x32xf32, #tpu.memory_space<vmem>>, vector<1x8x32xf32>
    %5 = vector.shape_cast %4 : vector<1x8x32xf32> to vector<8x32xf32>
    %c0_10 = arith.constant 0 : index
    %c0_11 = arith.constant 0 : index
    %c0_12 = arith.constant 0 : index
    %6 = vector.load %arg2[%c0_10, %c0_11, %c0_12] : memref<1x8x32xf32, #tpu.memory_space<vmem>>, vector<1x8x32xf32>
    %7 = vector.shape_cast %6 : vector<1x8x32xf32> to vector<8x32xf32>
    %cst = arith.constant dense<0.000000e+00> : vector<8x32xf32>
    %8 = tpu.matmul %7, %0, %cst {dimension_numbers = #tpu.dot_dimension_numbers<[1], [0], [0], [1], [0, 0, 1, 1], [], []>} : vector<8x32xf32>, vector<32x32xf32>, vector<8x32xf32> -> vector<8x32xf32>
    %cst_13 = arith.constant dense<0.000000e+00> : vector<8x32xf32>
    %9 = tpu.matmul %5, %1, %cst_13 {dimension_numbers = #tpu.dot_dimension_numbers<[1], [0], [0], [1], [0, 0, 1, 1], [], []>} : vector<8x32xf32>, vector<32x32xf32>, vector<8x32xf32> -> vector<8x32xf32>
    %10 = arith.addf %8, %9 : vector<8x32xf32>
    %11 = vector.broadcast %3 : vector<1x32xf32> to vector<8x32xf32>
    %12 = arith.addf %10, %11 : vector<8x32xf32>
    %cst_14 = arith.constant 0.000000e+00 : f32
    %13 = vector.broadcast %cst_14 : f32 to vector<8x32xf32>
    %14 = arith.maximumf %12, %13 : vector<8x32xf32>
    %cst_15 = arith.constant dense<0.000000e+00> : vector<8x8xf32>
    %15 = tpu.matmul %14, %2, %cst_15 {dimension_numbers = #tpu.dot_dimension_numbers<[1], [0], [0], [1], [0, 0, 1, 1], [], []>} : vector<8x32xf32>, vector<32x8xf32>, vector<8x8xf32> -> vector<8x8xf32>
    %16 = vector.shape_cast %15 : vector<8x8xf32> to vector<1x8x8xf32>
    %cst_16 = arith.constant dense<0xFF800000> : vector<1x8xf32>
    %17 = vector.multi_reduction <maximumf>, %16, %cst_16 [1] : vector<1x8x8xf32> to vector<1x8xf32>
    %18 = vector.shape_cast %17 : vector<1x8xf32> to vector<1x1x8xf32>
    %19 = vector.broadcast %18 : vector<1x1x8xf32> to vector<1x8x8xf32>
    %20 = arith.subf %16, %19 : vector<1x8x8xf32>
    %21 = math.exp %20 : vector<1x8x8xf32>
    %cst_17 = arith.constant dense<0.000000e+00> : vector<1x8xf32>
    %22 = vector.multi_reduction <add>, %21, %cst_17 [1] : vector<1x8x8xf32> to vector<1x8xf32>
    %23 = vector.shape_cast %22 : vector<1x8xf32> to vector<1x1x8xf32>
    %24 = vector.broadcast %23 : vector<1x1x8xf32> to vector<1x8x8xf32>
    %25 = arith.divf %21, %24 : vector<1x8x8xf32>
    %c0_18 = arith.constant 0 : index
    %c0_19 = arith.constant 0 : index
    %c0_20 = arith.constant 0 : index
    %26 = vector.load %arg3[%c0_18, %c0_19, %c0_20] : memref<1x8x32xf32, #tpu.memory_space<vmem>>, vector<1x8x32xf32>
    %cst_21 = arith.constant dense<0.000000e+00> : vector<1x8x32xf32>
    %27 = tpu.matmul %25, %26, %cst_21 {dimension_numbers = #tpu.dot_dimension_numbers<[1], [1], [2], [2], [0, 0, 0, 2, 1, 2], [0], [0]>} : vector<1x8x8xf32>, vector<1x8x32xf32>, vector<1x8x32xf32> -> vector<1x8x32xf32>
    %c0_22 = arith.constant 0 : index
    %c0_23 = arith.constant 0 : index
    %c0_24 = arith.constant 0 : index
    %28 = vector.load %arg8[%c0_22, %c0_23, %c0_24] : memref<1x8x32xf32, #tpu.memory_space<vmem>>, vector<1x8x32xf32>
    tpu.vector_store %arg8[%c0_22, %c0_23, %c0_24], %27 {strides = array<i32>} : memref<1x8x32xf32, #tpu.memory_space<vmem>>, vector<1x8x32xf32>,
    return
  }
  func.func @transform_0(%arg0: i32) -> (i32, i32, i32) {
    %c0_i32 = arith.constant 0 : i32
    %c0_i32_0 = arith.constant 0 : i32
    %c0_i32_1 = arith.constant 0 : i32
    return %arg0, %c0_i32, %c0_i32_0 : i32, i32, i32
  }
  func.func @transform_1(%arg0: i32) -> (i32, i32, i32) {
    %c0_i32 = arith.constant 0 : i32
    %c0_i32_0 = arith.constant 0 : i32
    %c0_i32_1 = arith.constant 0 : i32
    return %arg0, %c0_i32, %c0_i32_0 : i32, i32, i32
  }
  func.func @transform_2(%arg0: i32) -> (i32, i32, i32) {
    %c0_i32 = arith.constant 0 : i32
    %c0_i32_0 = arith.constant 0 : i32
    %c0_i32_1 = arith.constant 0 : i32
    return %arg0, %c0_i32, %c0_i32_0 : i32, i32, i32
  }
  func.func @transform_3(%arg0: i32) -> (i32, i32) {
    %c0_i32 = arith.constant 0 : i32
    %c0_i32_0 = arith.constant 0 : i32
    %c0_i32_1 = arith.constant 0 : i32
    return %c0_i32, %c0_i32_0 : i32, i32
  }
  func.func @transform_4(%arg0: i32) -> (i32, i32) {
    %c0_i32 = arith.constant 0 : i32
    %c0_i32_0 = arith.constant 0 : i32
    %c0_i32_1 = arith.constant 0 : i32
    return %c0_i32, %c0_i32_0 : i32, i32
  }
  func.func @transform_5(%arg0: i32) -> (i32, i32) {
    %c0_i32 = arith.constant 0 : i32
    %c0_i32_0 = arith.constant 0 : i32
    %c0_i32_1 = arith.constant 0 : i32
    return %c0_i32, %c0_i32_0 : i32, i32
  }
  func.func @transform_6(%arg0: i32) -> (i32, i32) {
    %c0_i32 = arith.constant 0 : i32
    %c0_i32_0 = arith.constant 0 : i32
    %c0_i32_1 = arith.constant 0 : i32
    return %c0_i32, %c0_i32_0 : i32, i32
  }
  func.func @transform_7(%arg0: i32) -> (i32, i32, i32) {
    %c0_i32 = arith.constant 0 : i32
    %c0_i32_0 = arith.constant 0 : i32
    %c0_i32_1 = arith.constant 0 : i32
    return %arg0, %c0_i32, %c0_i32_0 : i32, i32, i32
  }
}

</mosaic_0001>

<bundles_post_ra>
// kernel: forward.1
= control target key start
LH: loop header
LB: loop body
LE: loop exit
PB: predicated region body
PF: predicated region fallthrough
CT: control target
= control target key end

     0   :  { %s1522_s0 = inlined_call_operand.vmem [shape: f32[2,8,32], index: 0, kind: input, shape index: {}]   ;;  %s1523_s1 = inlined_call_operand.hbm [shape: f32[2,8,32], index: 1, kind: input, shape index: {}]   ;;  %s1524_s2 = inlined_call_operand.hbm [shape: f32[2,8,32], index: 2, kind: input, shape index: {}]   ;;  %s1525_s3 = inlined_call_operand.vmem [shape: f32[32,32], index: 3, kind: input, shape index: {}]   ;;  %s1526_s4 = inlined_call_operand.hbm [shape: f32[32,32], index: 4, kind: input, shape index: {}]   ;;  %s1527_s5 = inlined_call_operand.vmem [shape: f32[32,8], index: 5, kind: input, shape index: {}]   ;;  %s1528_s6 = inlined_call_operand.vmem [shape: f32[1,32], index: 6, kind: input, shape index: {}]   ;;  %s1529_s7 = inlined_call_operand.hbm [shape: f32[2,8,32], index: 7, kind: output, shape index: {}]  }
   0x1   :  { %1537 = sst [smem:[#allocation16_spill]] %s1526_s4 }
   0x2   :  { %12 = vsyncpa [#allocation3], 0 }
   0x3   :  { %14 = vsyncpa [#allocation3 + $0x1], 0 }
   0x4   :  { %15 = vsyncpa [#allocation6], 0 }
   0x5   :  { %17 = vsyncpa [#allocation6 + $0x1], 0 }
   0x6   :  { %18 = vsyncpa [#allocation4], 0 }
   0x7   :  { %20 = vsyncpa [#allocation4 + $0x1], 0  ;;  %s1240_s24 = smov 0   ;;  %s1242_s25 = smov 0  }
   0x8   :  { %s1244_s26 = smov 0   ;;  %s1246_s27 = smov 0  }
   0x9 LB: > { %1538 = sst [smem:[#allocation13_spill]] %s1185_s26  ;;  %s1261_s28 = sadd.s32 4294967295, %s1189_s27   ;;  %s1189_s27 = sphi %s1246_s27, %s1556_s27   ;;  %s1185_s26 = sphi %s1244_s26, %s1558_s26   ;;  %s1181_s25 = sphi %s1242_s25, %s1560_s25   ;;  %s1177_s24 = sphi %s1240_s24, %s1559_s24  }
   0xa   : > { %s860_s29 = sadd.s32 4294967294, %s1189_s27   ;;  %p72_p0 = scmp.ne.s32.totalorder %s1181_s25, %s1177_s24 }
   0xb   : > { %p1530_p1 = scmp.eq.s32.totalorder %s1261_s28, 0  ;;  %p212_p3 = scmp.eq.s32.totalorder %s860_s29, 1 }
   0xc   : > { %p861_p5 = scmp.ge.s32.totalorder %s1189_s27, 1  ;;  %p219_p7 = scmp.lt.s32.totalorder %s1189_s27, 3 }
   0xd   : > { %p1270_p4 = por %p1530_p1, %p72_p0  ;;  %p1275_p6 = por %p212_p3, %p72_p0 }
   0xe   : > { %p1280_p8 = pnand %p861_p5, %p219_p7  ;;  %s1191_s10 = smov [#allocation7]  }
   0xf   : > { %s1539_s30 = scalar_select %p1270_p4, 1, 0 }
  0x10   : > { %s1540_s8 = scalar_select %p1275_p6, 1, 0 }
  0x11   : > { %s1541_s9 = scalar_select %p1280_p8, 1, 0 }
  0x12   : > { %s234_s11 = sshll.u32 %s1191_s10, 4  ;;  %p966_p9 = pneg %p1280_p8  ;;  %s1284_s11 = int_to_ptr.vmem [resolvable:$true] %s234_s11 }
  0x13   : > { %s1296_s13 = sadd.s32 1, %s1189_s27   ;;  %s59_s14 = sadd.s32 1, %s1185_s26 }
  0x14   : > { %p1291_p11 = pnand %p966_p9, %p1530_p1  ;;  %1543 = sst [smem:[#allocation14_spill]] %s1296_s13 }
  0x15   : > { %s56_s15 = ssub.s32 %s1189_s27, %s1296_s13  ;;  %s1544_s4 = sld [smem:[#allocation16_spill]] }
  0x16   : > { %p1029_p13 = pneg %p1291_p11 }
  0x1b   : > { %s1027_s18 = scalar_lea.hbm %s1544_s4, 512 }
  0x1c   : > { %p1028_p12 = scmp.ne.s32.totalorder %s1544_s4, %s1027_s18  ;;  %p1034_p5 = scmp.lt.u32.totalorder %s1027_s18, %s1544_s4 }
  0x1e   : > { %p1030_p0 = pnand %p1029_p13, %p1028_p12 }
  0x20   : > { %p1031_p3 = pneg %p1030_p0 }
  0x22   : > { %p1036_p7 = pnand %p1034_p5, %p1031_p3 }
  0x24   : > { %1039 = shalt.err (!%p1036_p7)
}
  0x25   : > { %s1040_s23 = scalar_lea.vmem %s1284_s11, 512  ;;  %p1048_p2 = scmp.lt.s32.totalorder %s1284_s11, %s1284_s11 }
  0x26   : > { %p1041_p9 = scmp.ne.s32.totalorder %s1284_s11, %s1040_s23  ;;  %p1049_p6 = scmp.lt.s32.totalorder %s1040_s23, %s1040_s23 }
  0x28   : > { %p1043_p10 = pnand %p1041_p9, %p1029_p13  ;;  %p1050_p4 = por %p1049_p6, %p1048_p2 }
  0x2a   : > { %p1044_p1 = pneg %p1043_p10 }
  0x2c   : > { %p1051_p8 = pnand %p1050_p4, %p1044_p1 }
  0x2e   : > { %1054 = shalt.err (!%p1051_p8)
}
  0x2f   : > { %s1192_s29 = smov 128   ;;  %s1193_s10 = smov 8  }
  0x30   : > { %969 = dma.hbm_to_vmem [thread:$0]  (!%p1291_p11), %s1544_s4, 512, %s1284_s11, [#allocation6], %s1192_s29, %s1192_s29, %s1193_s10  }
  0x31   : > { %p57_p2 = scmp.eq.s32.totalorder %s56_s15, 0  ;;  %p66_p1 = scmp.ne.s32.totalorder %s1185_s26, %s1181_s25 }
  0x32   : > { %p67_p4 = scmp.eq.s32.totalorder %s1189_s27, 0  ;;  %p982_p6 = scmp.lt.s32.totalorder %s1189_s27, 2 }
  0x33   : > { %s1327_s18 = scalar_select %p57_p2, %s1185_s26, %s59_s14  }
  0x34   : > { %p68_p8 = por %p67_p4, %p66_p1  ;;  %p1546_p10 = scmp.eq.s32.totalorder %s1261_s28, 1 }
  0x35   : > { %1545 = sst [smem:[#allocation15_spill]] %s1327_s18  ;;  %s261_s20 = sand.u32 1, %s1185_s26  }
  0x36   : > { %p1331_p12 = por %p1546_p10, %p66_p1  ;;  %s865_s21 = sshll.u32 %s1189_s27, 7 }
  0x37   : > { %s1337_s22 = sshll.u32 %s261_s20, 3  ;;  %s1342_s11 = scalar_lea.hbm %s1523_s1, %s865_s21 }
  0x38   : > { %s1547_s19 = scalar_select %p1331_p12, 1, 0 }
  0x39   : > { %s265_s14 = scalar_lea.vmem [#allocation2], %s1337_s22  ;;  %p1345_p11 = pnand %p982_p6, %p68_p8 }
  0x3a   : > { %s272_s15 = sshll.u32 %s265_s14, 4  ;;  %s1354_s17 = scalar_lea.hbm %s1524_s2, %s865_s21  ;;  %s1349_s15 = int_to_ptr.vmem [resolvable:$true] %s272_s15 }
  0x3b   : > { %s262_s12 = scalar_lea.sflag [#allocation3], %s261_s20  ;;  %s1055_s23 = scalar_lea.hbm %s1342_s11, 128 }
  0x3c   : > { %p1056_p13 = scmp.ne.s32.totalorder %s1342_s11, %s1055_s23  ;;  %p1057_p0 = pneg %p1345_p11 }
  0x3d   : > { %s1060_s18 = scalar_lea.hbm %s1523_s1, 256  ;;  %p1061_p7 = scmp.lt.u32.totalorder %s1342_s11, %s1523_s1 }
  0x3e   : > { %p1058_p3 = pnand %p1057_p0, %p1056_p13  ;;  %p1062_p9 = scmp.lt.u32.totalorder %s1060_s18, %s1055_s23 }
  0x3f   : > { %p1064_p1 = scmp.lt.u32.totalorder %s1055_s23, %s1342_s11 }
  0x40   : > { %p1059_p5 = pneg %p1058_p3  ;;  %p1063_p2 = por %p1062_p9, %p1061_p7 }
  0x42   : > { %p1065_p4 = por %p1064_p1, %p1063_p2 }
  0x44   : > { %p1066_p6 = pnand %p1065_p4, %p1059_p5 }
  0x46   : > { %1069 = shalt.err (!%p1066_p6)
}
  0x47   : > { %s1070_s20 = scalar_lea.vmem %s1349_s15, 128  ;;  %s1194_s4 = smov [#allocation2]  }
  0x48   : > { %p1071_p8 = scmp.ne.s32.totalorder %s1349_s15, %s1070_s20  ;;  %s1075_s21 = sshll.u32 %s1194_s4, 4  ;;  %s1076_s21 = int_to_ptr.vmem [resolvable:$false] %s1075_s21 }
  0x49   : > { %s1077_s26 = scalar_lea.vmem %s1076_s21, 256  ;;  %p1078_p3 = scmp.lt.s32.totalorder %s1349_s15, %s1076_s21 }
  0x4a   : > { %p1073_p10 = pnand %p1071_p8, %p1057_p0  ;;  %p1079_p7 = scmp.lt.s32.totalorder %s1077_s26, %s1070_s20 }
  0x4c   : > { %p1074_p13 = pneg %p1073_p10  ;;  %p1080_p9 = por %p1079_p7, %p1078_p3 }
  0x4e   : > { %p1081_p2 = pnand %p1080_p9, %p1074_p13 }
  0x50   : > { %1084 = shalt.err (!%p1081_p2)
}
  0x51   : > { %973 = dma.hbm_to_vmem [thread:$0]  (!%p1345_p11), %s1342_s11, 128, %s1349_s15, %s262_s12  }
  0x52   : > { %s279_s13 = sand.u32 1, %s1189_s27   ;;  %s283_s18 = scalar_lea.vmem [#allocation5], %s1337_s22 }
  0x53   : > { %s290_s10 = sshll.u32 %s283_s18, 4  ;;  %s280_s16 = scalar_lea.sflag [#allocation6], %s279_s13  ;;  %s291_s10 = int_to_ptr.vmem [resolvable:$true] %s290_s10 }
  0x54   : > { %s1085_s23 = scalar_lea.hbm %s1354_s17, 128  ;;  %s1090_s4 = scalar_lea.hbm %s1524_s2, 256 }
  0x55   : > { %p1086_p5 = scmp.ne.s32.totalorder %s1354_s17, %s1085_s23  ;;  %p1091_p6 = scmp.lt.u32.totalorder %s1354_s17, %s1524_s2 }
  0x56   : > { %p1092_p8 = scmp.lt.u32.totalorder %s1090_s4, %s1085_s23  ;;  %p1094_p13 = scmp.lt.u32.totalorder %s1085_s23, %s1354_s17 }
  0x57   : > { %p1088_p1 = pnand %p1086_p5, %p1057_p0 }
  0x58   : > { %p1093_p10 = por %p1092_p8, %p1091_p6 }
  0x59   : > { %p1089_p4 = pneg %p1088_p1 }
  0x5a   : > { %p1095_p3 = por %p1094_p13, %p1093_p10 }
  0x5c   : > { %p1096_p7 = pnand %p1095_p3, %p1089_p4 }
  0x5e   : > { %1099 = shalt.err (!%p1096_p7)
}
  0x5f   : > { %s1100_s22 = scalar_lea.vmem %s291_s10, 128  ;;  %s1195_s11 = smov [#allocation5]  }
  0x60   : > { %p1101_p9 = scmp.ne.s32.totalorder %s291_s10, %s1100_s22  ;;  %s1105_s15 = sshll.u32 %s1195_s11, 4  ;;  %s1106_s15 = int_to_ptr.vmem [resolvable:$false] %s1105_s15 }
  0x61   : > { %s1107_s12 = scalar_lea.vmem %s1106_s15, 256  ;;  %p1108_p1 = scmp.lt.s32.totalorder %s291_s10, %s1106_s15 }
  0x62   : > { %p1103_p2 = pnand %p1101_p9, %p1057_p0  ;;  %p1109_p12 = scmp.lt.s32.totalorder %s1107_s12, %s1100_s22 }
  0x64   : > { %p1104_p5 = pneg %p1103_p2  ;;  %p1110_p6 = por %p1109_p12, %p1108_p1 }
  0x66   : > { %p1111_p8 = pnand %p1110_p6, %p1104_p5 }
  0x68   : > { %1114 = shalt.err (!%p1111_p8)
}
  0x69   : > { %976 = dma.hbm_to_vmem [thread:$0]  (!%p1345_p11), %s1354_s17, 128, %s291_s10, %s280_s16  }
  0x6a   : > { %p1549_p4 = scmp.ne.s32.totalorder %s1541_s9, 0 }
  0x6b   : > { %s1405_s13 = sand.u32 (!%p1549_p4), 1, %s1181_s25   ;;  %p1550_p12 = scmp.ne.s32.totalorder (!%p1549_p4), %s1539_s30, 0 }
  0x6c   : > { %299 = sbr.rel (%p1549_p4) target bundleno = 972 (0x3cc), region = 48  ;;  %s1408_s18 = sshll.u32 (!%p1549_p4), %s1405_s13, 3 }
  0x6d   : > { %s302_s23 = scalar_lea.sflag (!%p1549_p4), [#allocation3], %s1405_s13  ;;  %s305_s14 = scalar_lea.vmem (!%p1549_p4), [#allocation2], %s1408_s18 }
  0x73   : > { %1160 = dma.done.wait (%p1550_p12), %s302_s23, 128  }
  0x74   : > { %1162 = vsyncadd (%p1550_p12), %s302_s23, 4294967168  ;;  %s310_s9 = sand.u32 1, %s1261_s28   ;;  %s314_s17 = scalar_lea.vmem [#allocation5], %s1408_s18 }
  0x75   : > { %s311_s29 = scalar_lea.sflag [#allocation6], %s310_s9 }
  0x76   : > { %1164 = dma.done.wait (%p1550_p12), %s311_s29, 128  }
  0x77   : > { %1166 = vsyncadd (%p1550_p12), %s311_s29, 4294967168  ;;  %p1551_p11 = scmp.eq.s32.totalorder %s1261_s28, 0 }
  0x79   : > { %1168 = dma.done.wait (%p1551_p11), [#allocation6], 512   ;;  %p1552_p0 = pmov %p1551_p11 }
  0x7a   : > { %p358_p10 = scmp.lt.s32.totalorder %s1261_s28, 1  ;;  %v1196_v0 = vmov 0.0|0.0   ;;  %vm1197_vm0 = vmmov 0   ;;  %v1198_v1 = vmov 0.0   ;;  %v366_v2 = vld [vmem:[#allocation7] sm:$0xff]  ;;  %v367_v3 = vld [vmem:[#allocation7 + $0x8] sm:$0xff] }
  0x7b   : > { %1170 = vsyncadd (%p1552_p0), [#allocation6], 4294966784  ;;  %938 = vmatprep.subr.bf16.mxu0 %v1196_v0  ;;  %944 = vmatprep.subr.bf16.mxu1 %v1196_v0  ;;  %v362_v4 = vld [vmem:[%s1525_s3] sm:$0xff]  ;;  %v939_v5 = vpack.c.bf16 %v367_v3, %v366_v2  ;;  %v363_v6 = vld [vmem:[%s1525_s3 + $0x8] sm:$0xff]  ;;  %vm377_vm1 = vcmask 261120   ;;  %vm605_vm2 = vcmask 64512  }
  0x7c   : > { %908 = vmatprep.mubr.msk.f32.mxu0 %vm1197_vm0, %v1198_v1  ;;  %919 = vmatprep.mubr.msk.f32.mxu1 %vm1197_vm0, %v1198_v1  ;;  %s359_s30 = scalar_select %p358_p10, %s1261_s28, 1  ;;  %v368_v7 = vld [vmem:[#allocation7 + $0x10] sm:$0xff]  ;;  %v369_v8 = vld [vmem:[#allocation7 + $0x18] sm:$0xff]  ;;  %v945_v9 = vpack.c.bf16 %v363_v6, %v362_v4  ;;  %v376_v15 = vld [vmem:[%s305_s14] sm:$0xff] }
  0x7d   : > { %v364_v10 = vld [vmem:[%s1525_s3 + $0x10] sm:$0xff]  ;;  %v365_v11 = vld [vmem:[%s1525_s3 + $0x18] sm:$0xff]  ;;  %940 = vmatpush3.bf16.msra.mxu0 %v939_v5  ;;  %v942_v12 = vpack.c.bf16 %v369_v8, %v368_v7  ;;  %v370_v16 = vld [vmem:[%s1527_s5] sm:$0xff]  ;;  %s357_s11 = scalar_lea.vmem [#allocation8], %s1408_s18  ;;  %s733_s29 = scalar_lea.sflag [#allocation4], %s1405_s13 }
  0x7e   : > { %s873_s21 = sshll.u32 %s359_s30, 3  ;;  %946 = vmatpush3.bf16.msra.mxu1 %v945_v9  ;;  %941 = vmatprep.subr.bf16.mxu0 %v1196_v0  ;;  %v948_v13 = vpack.c.bf16 %v365_v11, %v364_v10  ;;  %v371_v17 = vld [vmem:[%s1527_s5 + $0x8] sm:$0xff]  ;;  %v372_v19 = vld [vmem:[%s1527_s5 + $0x10] sm:$0xff]  ;;  %v373_v20 = vld [vmem:[%s1527_s5 + $0x18] sm:$0xff]  ;;  %s746_s15 = sshll.u32 %s357_s11, 4  ;;  %s1479_s15 = int_to_ptr.vmem [resolvable:$true] %s746_s15 }
  0x7f   : > { %s361_s9 = scalar_lea.vmem %s1522_s0, %s873_s21  ;;  %947 = vmatprep.subr.bf16.mxu1 %v1196_v0  ;;  %v951_v18 = vpack.c.bf16 %v371_v17, %v370_v16  ;;  %v954_v21 = vpack.c.bf16 %v373_v20, %v372_v19  ;;  %v876_v23 = vld [vmem:[%s1528_s6] ss:$0 sm:$0xff]  ;;  %v625_v30 = vld [vmem:[%s314_s17] sm:$0xff]  ;;  %s880_s17 = sshll.u32 %s1261_s28, 7 }
  0x80   : > { %v375_v14 = vld [vmem:[%s361_s9] sm:$0xff]  ;;  %s1477_s9 = scalar_lea.hbm %s1529_s7, %s880_s17  ;;  %s1115_s30 = scalar_lea.vmem %s1479_s15, 128 }
  0x81   : > { %943 = vmatpush3.bf16.msra.mxu0 %v942_v12  ;;  %p1116_p13 = scmp.ne.s32.totalorder %s1479_s15, %s1115_s30  ;;  %p1553_p3 = scmp.ne.s32.totalorder %s1547_s19, 0 }
  0x82   : > { %949 = vmatpush3.bf16.msra.mxu1 %v948_v13  ;;  %950 = vmatprep.subr.bf16.mxu0 %v1196_v0  ;;  %s1199_s28 = smov [#allocation8]  }
  0x83   : > { %933 = vmatprep.subr.mxu1 %v1198_v1  ;;  %p1117_p7 = pnand %p1116_p13, %p1553_p3  ;;  %s1119_s18 = sshll.u32 %s1199_s28, 4  ;;  %s1120_s18 = int_to_ptr.vmem [resolvable:$false] %s1119_s18 }
  0x84   : > { %909 = vmatmul.mubr.msk.f32.vlgmr.msra.gmra.mrb[0].mxu0 %vm377_vm1, %v375_v14  ;;  %s1121_s10 = scalar_lea.vmem %s1120_s18, 256  ;;  %p1122_p2 = scmp.lt.s32.totalorder %s1479_s15, %s1120_s18 }
  0x85   : > { %920 = vmatmul.mubr.msk.f32.vlgmr.msra.gmra.mrb[0].mxu1 %vm377_vm1, %v376_v15  ;;  %930 = vmatprep.mubr.msk.f32.mxu0 %vm1197_vm0, %v1198_v1  ;;  %p1118_p9 = pneg %p1117_p7  ;;  %p1123_p5 = scmp.lt.s32.totalorder %s1121_s10, %s1115_s30 }
  0x86   : > { %935 = vmatprep.mubr.msk.f32.mxu1 %vm1197_vm0, %v1198_v1  ;;  %952 = vmatpush3.bf16.msra.mxu0 %v951_v18 }
  0x87   : > { %953 = vmatprep.subr.bf16.mxu0 %v1196_v0  ;;  %934 = vmatpush3.msra.mxu1 %v625_v30  ;;  %p1124_p1 = por %p1123_p5, %p1122_p2 }
  0x89   : > { %p1125_p6 = pnand %p1124_p1, %p1118_p9 }
  0x8a   : > { %955 = vmatpush3.bf16.msra.mxu0 %v954_v21 }
 0x157   : > { %v447_v22 = vpop.f32.mrb[0].mxu0 }
 0x158   : > { %v520_v24 = vpop.f32.mrb[0].mxu1  ;;  %v910_v25 = vpop.f32.mrb[1].mxu0 }
 0x159   : > { %v521_v26 = vadd.f32 %v520_v24, %v447_v22  ;;  %v921_v27 = vpop.f32.mrb[1].mxu1 }
 0x15b   : > { %v530_v28 = vadd.f32 %v876_v23, %v521_v26 }
 0x15d   : > { %v531_v29 = vmax.f32 %v530_v28, 0.0 }
 0x15f   : > { %931 = vmatmul.mubr.msk.f32.vlgmr.msra.gmra.mrb[2].mxu0 %vm377_vm1, %v531_v29 }
 0x232   : > { %v601_v31 = vpop.f32.mrb[2].mxu0 }
 0x233   : > { %v606_v32 = vsel %vm605_vm2, %v601_v31, -inf  ;;  %v932_v33 = vpop.f32.mrb[3].mxu0 }
 0x234   : > { %v607_v34 = vrot.slane %v606_v32, 4 }
 0x236   : > { %v608_v35 = vmax.f32 %v606_v32, %v607_v34 }
 0x238   : > { %v609_v36 = vrot.slane %v608_v35, 2 }
 0x23a   : > { %v610_v37 = vmax.f32 %v608_v35, %v609_v36 }
 0x23c   : > { %v611_v38 = vrot.slane %v610_v37, 1 }
 0x23e   : > { %v612_v39 = vmax.f32 %v610_v37, %v611_v38 }
 0x240   : > { %v613_v40 = vsub.f32 %v601_v31, %v612_v39 }
 0x242   : > { %v614_v41 = vmul.f32 1.442695, %v613_v40 }
 0x244   : > { %1023 = vpow2.f32 %v614_v41 }
 0x24e   : > { %v1024_v42 = vpop.eup %1023 }
 0x24f   : > { %v616_v43 = vsel %vm605_vm2, %v1024_v42, 0.0 }
 0x250   : > { %v617_v44 = vrot.slane %v616_v43, 4 }
 0x252   : > { %v618_v45 = vadd.f32 %v617_v44, %v616_v43 }
 0x254   : > { %v619_v46 = vrot.slane %v618_v45, 2 }
 0x256   : > { %v620_v47 = vadd.f32 %v619_v46, %v618_v45 }
 0x258   : > { %v621_v48 = vrot.slane %v620_v47, 1 }
 0x25a   : > { %v622_v49 = vadd.f32 %v621_v48, %v620_v47 }
 0x25c   : > { %1025 = vrcp.f32 %v622_v49 }
 0x266   : > { %v1026_v50 = vpop.eup %1025 }
 0x267   : > { %v624_v51 = vmul.f32 %v1026_v50, %v1024_v42 }
 0x269   : > { %626 = vxpose.xlu0.b32.start.end [1/1] (short) (narrow) %v624_v51, 8 }
 0x2e9   : > { %v642_v52 = vpop.trf.xlu0 }
 0x2ea   : > { %936 = vmatmul.mubr.msk.f32.vlgmr.msra.gmra.mrb[2].mxu1 %vm605_vm2, %v642_v52 }
 0x3bd   : > { %v727_v53 = vpop.f32.mrb[2].mxu1 }
 0x3be   : > { %731 = vst.msk [vmem:[%s357_s11] sm:$0xff] %vm377_vm1, %v727_v53  ;;  %v937_v54 = vpop.f32.mrb[3].mxu1 }
 0x3bf   : > { %1128 = shalt.err (!%p1125_p6)
}
 0x3c0   : > { %s1129_s13 = scalar_lea.hbm %s1477_s9, 128  ;;  %s1133_s20 = scalar_lea.hbm %s1529_s7, 256 }
 0x3c1   : > { %p1130_p8 = scmp.ne.s32.totalorder %s1477_s9, %s1129_s13  ;;  %p1134_p11 = scmp.lt.u32.totalorder %s1477_s9, %s1529_s7 }
 0x3c2   : > { %p1135_p0 = scmp.lt.u32.totalorder %s1133_s20, %s1129_s13  ;;  %p1137_p13 = scmp.lt.u32.totalorder %s1129_s13, %s1477_s9 }
 0x3c3   : > { %p1131_p4 = pnand %p1130_p8, %p1553_p3 }
 0x3c4   : > { %p1136_p10 = por %p1135_p0, %p1134_p11 }
 0x3c5   : > { %p1132_p12 = pneg %p1131_p4 }
 0x3c6   : > { %p1138_p7 = por %p1137_p13, %p1136_p10 }
 0x3c8   : > { %p1139_p9 = pnand %p1138_p7, %p1132_p12 }
 0x3ca   : > { %1142 = shalt.err (!%p1139_p9)
}
 0x3cb   : > { %964 = dma.vmem_to_hbm [thread:$0]  (%p1553_p3), %s1479_s15, 128, %s1477_s9, %s733_s29  }
 0x3cc PF: > { %s758_s26 = sand.u32 1, %s1177_s24   ;;  %p1554_p2 = scmp.ne.s32.totalorder %s1540_s8, 0 }
 0x3cd   : > { %p1555_p5 = scmp.ge.s32.totalorder %s1189_s27, 2  ;;  %s759_s22 = scalar_lea.sflag [#allocation4], %s758_s26 }
 0x3cf   : > { %p978_p1 = pnand %p1555_p5, %p1554_p2 }
 0x3d1   : > { %1172 = dma.done.wait (!%p978_p1), %s759_s22, 128  }
 0x3d2   : > { %1174 = vsyncadd (!%p978_p1), %s759_s22, 4294967168  ;;  %s1556_s27 = sld [smem:[#allocation14_spill]]  ;;  %s1557_s17 = sld [smem:[#allocation13_spill]] }
 0x3d3   : > { %s1558_s26 = sld [smem:[#allocation15_spill]]  ;;  %s1559_s24 = smov %s1181_s25 }
 0x3d8   : > { %p23_p6 = scmp.ge.s32.totalorder %s1556_s27, 4   ;;  %s1560_s25 = smov %s1557_s17 }
 0x3da   :  { %25 = sbr.rel (!%p23_p6) target bundleno = 9 (0x9), region = 113 }
 0x3e1   :  { %764 = vsyncpa [#allocation3], 1 }
 0x3e2   :  { %766 = vsyncpa [#allocation3 + $0x1], 1 }
 0x3e3   :  { %767 = vsyncpa [#allocation6], 1 }
 0x3e4   :  { %769 = vsyncpa [#allocation6 + $0x1], 1 }
 0x3e5   :  { %770 = vsyncpa [#allocation4], 1 }
 0x3e6   :  { %772 = vsyncpa [#allocation4 + $0x1], 1 }

// kernel: forward.1
= control target key start
LH: loop header
LB: loop body
LE: loop exit
PB: predicated region body
PF: predicated region fallthrough
CT: control target
= control target key end

     0   :  { %s1522_s0 = inlined_call_operand.vmem [shape: f32[2,8,32], index: 0, kind: input, shape index: {}]   ;;  %s1523_s1 = inlined_call_operand.hbm [shape: f32[2,8,32], index: 1, kind: input, shape index: {}]   ;;  %s1524_s2 = inlined_call_operand.hbm [shape: f32[2,8,32], index: 2, kind: input, shape index: {}]   ;;  %s1525_s3 = inlined_call_operand.vmem [shape: f32[32,32], index: 3, kind: input, shape index: {}]   ;;  %s1526_s4 = inlined_call_operand.hbm [shape: f32[32,32], index: 4, kind: input, shape index: {}]   ;;  %s1527_s5 = inlined_call_operand.vmem [shape: f32[32,8], index: 5, kind: input, shape index: {}]   ;;  %s1528_s6 = inlined_call_operand.vmem [shape: f32[1,32], index: 6, kind: input, shape index: {}]   ;;  %s1529_s7 = inlined_call_operand.hbm [shape: f32[2,8,32], index: 7, kind: output, shape index: {}]  }
   0x1   :  { %1537 = sst [smem:[#allocation16_spill]] %s1526_s4 }
   0x2   :  { %12 = vsyncpa [#allocation3], 0 }
   0x3   :  { %14 = vsyncpa [#allocation3 + $0x1], 0 }
   0x4   :  { %15 = vsyncpa [#allocation6], 0 }
   0x5   :  { %17 = vsyncpa [#allocation6 + $0x1], 0 }
   0x6   :  { %18 = vsyncpa [#allocation4], 0 }
   0x7   :  { %20 = vsyncpa [#allocation4 + $0x1], 0  ;;  %s1240_s24 = smov 0   ;;  %s1242_s25 = smov 0  }
   0x8   :  { %s1244_s26 = smov 0   ;;  %s1246_s27 = smov 0  }
   0x9 LB: > { %1538 = sst [smem:[#allocation13_spill]] %s1185_s26  ;;  %s1261_s28 = sadd.s32 4294967295, %s1189_s27   ;;  %s1189_s27 = sphi %s1246_s27, %s1556_s27   ;;  %s1185_s26 = sphi %s1244_s26, %s1558_s26   ;;  %s1181_s25 = sphi %s1242_s25, %s1560_s25   ;;  %s1177_s24 = sphi %s1240_s24, %s1559_s24  }
   0xa   : > { %s860_s29 = sadd.s32 4294967294, %s1189_s27   ;;  %p72_p0 = scmp.ne.s32.totalorder %s1181_s25, %s1177_s24 }
   0xb   : > { %p1530_p1 = scmp.eq.s32.totalorder %s1261_s28, 0  ;;  %p212_p3 = scmp.eq.s32.totalorder %s860_s29, 1 }
   0xc   : > { %p861_p5 = scmp.ge.s32.totalorder %s1189_s27, 1  ;;  %p219_p7 = scmp.lt.s32.totalorder %s1189_s27, 3 }
   0xd   : > { %p1270_p4 = por %p1530_p1, %p72_p0  ;;  %p1275_p6 = por %p212_p3, %p72_p0 }
   0xe   : > { %p1280_p8 = pnand %p861_p5, %p219_p7  ;;  %s1191_s10 = smov [#allocation7]  }
   0xf   : > { %s1539_s30 = scalar_select %p1270_p4, 1, 0 }
  0x10   : > { %s1540_s8 = scalar_select %p1275_p6, 1, 0 }
  0x11   : > { %s1541_s9 = scalar_select %p1280_p8, 1, 0 }
  0x12   : > { %s234_s11 = sshll.u32 %s1191_s10, 4  ;;  %p966_p9 = pneg %p1280_p8  ;;  %s1284_s11 = int_to_ptr.vmem [resolvable:$true] %s234_s11 }
  0x13   : > { %s1296_s13 = sadd.s32 1, %s1189_s27   ;;  %s59_s14 = sadd.s32 1, %s1185_s26 }
  0x14   : > { %p1291_p11 = pnand %p966_p9, %p1530_p1  ;;  %1543 = sst [smem:[#allocation14_spill]] %s1296_s13 }
  0x15   : > { %s56_s15 = ssub.s32 %s1189_s27, %s1296_s13  ;;  %s1544_s4 = sld [smem:[#allocation16_spill]] }
  0x16   : > { %p1029_p13 = pneg %p1291_p11 }
  0x1b   : > { %s1027_s18 = scalar_lea.hbm %s1544_s4, 512 }
  0x1c   : > { %p1028_p12 = scmp.ne.s32.totalorder %s1544_s4, %s1027_s18  ;;  %p1034_p5 = scmp.lt.u32.totalorder %s1027_s18, %s1544_s4 }
  0x1e   : > { %p1030_p0 = pnand %p1029_p13, %p1028_p12 }
  0x20   : > { %p1031_p3 = pneg %p1030_p0 }
  0x22   : > { %p1036_p7 = pnand %p1034_p5, %p1031_p3 }
  0x24   : > { %1039 = shalt.err (!%p1036_p7)
}
  0x25   : > { %s1040_s23 = scalar_lea.vmem %s1284_s11, 512  ;;  %p1048_p2 = scmp.lt.s32.totalorder %s1284_s11, %s1284_s11 }
  0x26   : > { %p1041_p9 = scmp.ne.s32.totalorder %s1284_s11, %s1040_s23  ;;  %p1049_p6 = scmp.lt.s32.totalorder %s1040_s23, %s1040_s23 }
  0x28   : > { %p1043_p10 = pnand %p1041_p9, %p1029_p13  ;;  %p1050_p4 = por %p1049_p6, %p1048_p2 }
  0x2a   : > { %p1044_p1 = pneg %p1043_p10 }
  0x2c   : > { %p1051_p8 = pnand %p1050_p4, %p1044_p1 }
  0x2e   : > { %1054 = shalt.err (!%p1051_p8)
}
  0x2f   : > { %s1192_s29 = smov 128   ;;  %s1193_s10 = smov 8  }
  0x30   : > { %969 = dma.hbm_to_vmem [thread:$0]  (!%p1291_p11), %s1544_s4, 512, %s1284_s11, [#allocation6], %s1192_s29, %s1192_s29, %s1193_s10  }
  0x31   : > { %p57_p2 = scmp.eq.s32.totalorder %s56_s15, 0  ;;  %p66_p1 = scmp.ne.s32.totalorder %s1185_s26, %s1181_s25 }
  0x32   : > { %p67_p4 = scmp.eq.s32.totalorder %s1189_s27, 0  ;;  %p982_p6 = scmp.lt.s32.totalorder %s1189_s27, 2 }
  0x33   : > { %s1327_s18 = scalar_select %p57_p2, %s1185_s26, %s59_s14  }
  0x34   : > { %p68_p8 = por %p67_p4, %p66_p1  ;;  %p1546_p10 = scmp.eq.s32.totalorder %s1261_s28, 1 }
  0x35   : > { %1545 = sst [smem:[#allocation15_spill]] %s1327_s18  ;;  %s261_s20 = sand.u32 1, %s1185_s26  }
  0x36   : > { %p1331_p12 = por %p1546_p10, %p66_p1  ;;  %s865_s21 = sshll.u32 %s1189_s27, 7 }
  0x37   : > { %s1337_s22 = sshll.u32 %s261_s20, 3  ;;  %s1342_s11 = scalar_lea.hbm %s1523_s1, %s865_s21 }
  0x38   : > { %s1547_s19 = scalar_select %p1331_p12, 1, 0 }
  0x39   : > { %s265_s14 = scalar_lea.vmem [#allocation2], %s1337_s22  ;;  %p1345_p11 = pnand %p982_p6, %p68_p8 }
  0x3a   : > { %s272_s15 = sshll.u32 %s265_s14, 4  ;;  %s1354_s17 = scalar_lea.hbm %s1524_s2, %s865_s21  ;;  %s1349_s15 = int_to_ptr.vmem [resolvable:$true] %s272_s15 }
  0x3b   : > { %s262_s12 = scalar_lea.sflag [#allocation3], %s261_s20  ;;  %s1055_s23 = scalar_lea.hbm %s1342_s11, 128 }
  0x3c   : > { %p1056_p13 = scmp.ne.s32.totalorder %s1342_s11, %s1055_s23  ;;  %p1057_p0 = pneg %p1345_p11 }
  0x3d   : > { %s1060_s18 = scalar_lea.hbm %s1523_s1, 256  ;;  %p1061_p7 = scmp.lt.u32.totalorder %s1342_s11, %s1523_s1 }
  0x3e   : > { %p1058_p3 = pnand %p1057_p0, %p1056_p13  ;;  %p1062_p9 = scmp.lt.u32.totalorder %s1060_s18, %s1055_s23 }
  0x3f   : > { %p1064_p1 = scmp.lt.u32.totalorder %s1055_s23, %s1342_s11 }
  0x40   : > { %p1059_p5 = pneg %p1058_p3  ;;  %p1063_p2 = por %p1062_p9, %p1061_p7 }
  0x42   : > { %p1065_p4 = por %p1064_p1, %p1063_p2 }
  0x44   : > { %p1066_p6 = pnand %p1065_p4, %p1059_p5 }
  0x46   : > { %1069 = shalt.err (!%p1066_p6)
}
  0x47   : > { %s1070_s20 = scalar_lea.vmem %s1349_s15, 128  ;;  %s1194_s4 = smov [#allocation2]  }
  0x48   : > { %p1071_p8 = scmp.ne.s32.totalorder %s1349_s15, %s1070_s20  ;;  %s1075_s21 = sshll.u32 %s1194_s4, 4  ;;  %s1076_s21 = int_to_ptr.vmem [resolvable:$false] %s1075_s21 }
  0x49   : > { %s1077_s26 = scalar_lea.vmem %s1076_s21, 256  ;;  %p1078_p3 = scmp.lt.s32.totalorder %s1349_s15, %s1076_s21 }
  0x4a   : > { %p1073_p10 = pnand %p1071_p8, %p1057_p0  ;;  %p1079_p7 = scmp.lt.s32.totalorder %s1077_s26, %s1070_s20 }
  0x4c   : > { %p1074_p13 = pneg %p1073_p10  ;;  %p1080_p9 = por %p1079_p7, %p1078_p3 }
  0x4e   : > { %p1081_p2 = pnand %p1080_p9, %p1074_p13 }
  0x50   : > { %1084 = shalt.err (!%p1081_p2)
}
  0x51   : > { %973 = dma.hbm_to_vmem [thread:$0]  (!%p1345_p11), %s1342_s11, 128, %s1349_s15, %s262_s12  }
  0x52   : > { %s279_s13 = sand.u32 1, %s1189_s27   ;;  %s283_s18 = scalar_lea.vmem [#allocation5], %s1337_s22 }
  0x53   : > { %s290_s10 = sshll.u32 %s283_s18, 4  ;;  %s280_s16 = scalar_lea.sflag [#allocation6], %s279_s13  ;;  %s291_s10 = int_to_ptr.vmem [resolvable:$true] %s290_s10 }
  0x54   : > { %s1085_s23 = scalar_lea.hbm %s1354_s17, 128  ;;  %s1090_s4 = scalar_lea.hbm %s1524_s2, 256 }
  0x55   : > { %p1086_p5 = scmp.ne.s32.totalorder %s1354_s17, %s1085_s23  ;;  %p1091_p6 = scmp.lt.u32.totalorder %s1354_s17, %s1524_s2 }
  0x56   : > { %p1092_p8 = scmp.lt.u32.totalorder %s1090_s4, %s1085_s23  ;;  %p1094_p13 = scmp.lt.u32.totalorder %s1085_s23, %s1354_s17 }
  0x57   : > { %p1088_p1 = pnand %p1086_p5, %p1057_p0 }
  0x58   : > { %p1093_p10 = por %p1092_p8, %p1091_p6 }
  0x59   : > { %p1089_p4 = pneg %p1088_p1 }
  0x5a   : > { %p1095_p3 = por %p1094_p13, %p1093_p10 }
  0x5c   : > { %p1096_p7 = pnand %p1095_p3, %p1089_p4 }
  0x5e   : > { %1099 = shalt.err (!%p1096_p7)
}
  0x5f   : > { %s1100_s22 = scalar_lea.vmem %s291_s10, 128  ;;  %s1195_s11 = smov [#allocation5]  }
  0x60   : > { %p1101_p9 = scmp.ne.s32.totalorder %s291_s10, %s1100_s22  ;;  %s1105_s15 = sshll.u32 %s1195_s11, 4  ;;  %s1106_s15 = int_to_ptr.vmem [resolvable:$false] %s1105_s15 }
  0x61   : > { %s1107_s12 = scalar_lea.vmem %s1106_s15, 256  ;;  %p1108_p1 = scmp.lt.s32.totalorder %s291_s10, %s1106_s15 }
  0x62   : > { %p1103_p2 = pnand %p1101_p9, %p1057_p0  ;;  %p1109_p12 = scmp.lt.s32.totalorder %s1107_s12, %s1100_s22 }
  0x64   : > { %p1104_p5 = pneg %p1103_p2  ;;  %p1110_p6 = por %p1109_p12, %p1108_p1 }
  0x66   : > { %p1111_p8 = pnand %p1110_p6, %p1104_p5 }
  0x68   : > { %1114 = shalt.err (!%p1111_p8)
}
  0x69   : > { %976 = dma.hbm_to_vmem [thread:$0]  (!%p1345_p11), %s1354_s17, 128, %s291_s10, %s280_s16  }
  0x6a   : > { %p1549_p4 = scmp.ne.s32.totalorder %s1541_s9, 0 }
  0x6b   : > { %s1405_s13 = sand.u32 (!%p1549_p4), 1, %s1181_s25   ;;  %p1550_p12 = scmp.ne.s32.totalorder (!%p1549_p4), %s1539_s30, 0 }
  0x6c   : > { %299 = sbr.rel (%p1549_p4) target bundleno = 972 (0x3cc), region = 48  ;;  %s1408_s18 = sshll.u32 (!%p1549_p4), %s1405_s13, 3 }
  0x6d   : > { %s302_s23 = scalar_lea.sflag (!%p1549_p4), [#allocation3], %s1405_s13  ;;  %s305_s14 = scalar_lea.vmem (!%p1549_p4), [#allocation2], %s1408_s18 }
  0x73   : > { %1160 = dma.done.wait (%p1550_p12), %s302_s23, 128  }
  0x74   : > { %1162 = vsyncadd (%p1550_p12), %s302_s23, 4294967168  ;;  %s310_s9 = sand.u32 1, %s1261_s28   ;;  %s314_s17 = scalar_lea.vmem [#allocation5], %s1408_s18 }
  0x75   : > { %s311_s29 = scalar_lea.sflag [#allocation6], %s310_s9 }
  0x76   : > { %1164 = dma.done.wait (%p1550_p12), %s311_s29, 128  }
  0x77   : > { %1166 = vsyncadd (%p1550_p12), %s311_s29, 4294967168  ;;  %p1551_p11 = scmp.eq.s32.totalorder %s1261_s28, 0 }
  0x79   : > { %1168 = dma.done.wait (%p1551_p11), [#allocation6], 512   ;;  %p1552_p0 = pmov %p1551_p11 }
  0x7a   : > { %p358_p10 = scmp.lt.s32.totalorder %s1261_s28, 1  ;;  %v1196_v0 = vmov 0.0|0.0   ;;  %vm1197_vm0 = vmmov 0   ;;  %v1198_v1 = vmov 0.0   ;;  %v366_v2 = vld [vmem:[#allocation7] sm:$0xff]  ;;  %v367_v3 = vld [vmem:[#allocation7 + $0x8] sm:$0xff] }
  0x7b   : > { %1170 = vsyncadd (%p1552_p0), [#allocation6], 4294966784  ;;  %938 = vmatprep.subr.bf16.mxu0 %v1196_v0  ;;  %944 = vmatprep.subr.bf16.mxu1 %v1196_v0  ;;  %v362_v4 = vld [vmem:[%s1525_s3] sm:$0xff]  ;;  %v939_v5 = vpack.c.bf16 %v367_v3, %v366_v2  ;;  %v363_v6 = vld [vmem:[%s1525_s3 + $0x8] sm:$0xff]  ;;  %vm377_vm1 = vcmask 261120   ;;  %vm605_vm2 = vcmask 64512  }
  0x7c   : > { %908 = vmatprep.mubr.msk.f32.mxu0 %vm1197_vm0, %v1198_v1  ;;  %919 = vmatprep.mubr.msk.f32.mxu1 %vm1197_vm0, %v1198_v1  ;;  %s359_s30 = scalar_select %p358_p10, %s1261_s28, 1  ;;  %v368_v7 = vld [vmem:[#allocation7 + $0x10] sm:$0xff]  ;;  %v369_v8 = vld [vmem:[#allocation7 + $0x18] sm:$0xff]  ;;  %v945_v9 = vpack.c.bf16 %v363_v6, %v362_v4  ;;  %v376_v15 = vld [vmem:[%s305_s14] sm:$0xff] }
  0x7d   : > { %v364_v10 = vld [vmem:[%s1525_s3 + $0x10] sm:$0xff]  ;;  %v365_v11 = vld [vmem:[%s1525_s3 + $0x18] sm:$0xff]  ;;  %940 = vmatpush3.bf16.msra.mxu0 %v939_v5  ;;  %v942_v12 = vpack.c.bf16 %v369_v8, %v368_v7  ;;  %v370_v16 = vld [vmem:[%s1527_s5] sm:$0xff]  ;;  %s357_s11 = scalar_lea.vmem [#allocation8], %s1408_s18  ;;  %s733_s29 = scalar_lea.sflag [#allocation4], %s1405_s13 }
  0x7e   : > { %s873_s21 = sshll.u32 %s359_s30, 3  ;;  %946 = vmatpush3.bf16.msra.mxu1 %v945_v9  ;;  %941 = vmatprep.subr.bf16.mxu0 %v1196_v0  ;;  %v948_v13 = vpack.c.bf16 %v365_v11, %v364_v10  ;;  %v371_v17 = vld [vmem:[%s1527_s5 + $0x8] sm:$0xff]  ;;  %v372_v19 = vld [vmem:[%s1527_s5 + $0x10] sm:$0xff]  ;;  %v373_v20 = vld [vmem:[%s1527_s5 + $0x18] sm:$0xff]  ;;  %s746_s15 = sshll.u32 %s357_s11, 4  ;;  %s1479_s15 = int_to_ptr.vmem [resolvable:$true] %s746_s15 }
  0x7f   : > { %s361_s9 = scalar_lea.vmem %s1522_s0, %s873_s21  ;;  %947 = vmatprep.subr.bf16.mxu1 %v1196_v0  ;;  %v951_v18 = vpack.c.bf16 %v371_v17, %v370_v16  ;;  %v954_v21 = vpack.c.bf16 %v373_v20, %v372_v19  ;;  %v876_v23 = vld [vmem:[%s1528_s6] ss:$0 sm:$0xff]  ;;  %v625_v30 = vld [vmem:[%s314_s17] sm:$0xff]  ;;  %s880_s17 = sshll.u32 %s1261_s28, 7 }
  0x80   : > { %v375_v14 = vld [vmem:[%s361_s9] sm:$0xff]  ;;  %s1477_s9 = scalar_lea.hbm %s1529_s7, %s880_s17  ;;  %s1115_s30 = scalar_lea.vmem %s1479_s15, 128 }
  0x81   : > { %943 = vmatpush3.bf16.msra.mxu0 %v942_v12  ;;  %p1116_p13 = scmp.ne.s32.totalorder %s1479_s15, %s1115_s30  ;;  %p1553_p3 = scmp.ne.s32.totalorder %s1547_s19, 0 }
  0x82   : > { %949 = vmatpush3.bf16.msra.mxu1 %v948_v13  ;;  %950 = vmatprep.subr.bf16.mxu0 %v1196_v0  ;;  %s1199_s28 = smov [#allocation8]  }
  0x83   : > { %933 = vmatprep.subr.mxu1 %v1198_v1  ;;  %p1117_p7 = pnand %p1116_p13, %p1553_p3  ;;  %s1119_s18 = sshll.u32 %s1199_s28, 4  ;;  %s1120_s18 = int_to_ptr.vmem [resolvable:$false] %s1119_s18 }
  0x84   : > { %909 = vmatmul.mubr.msk.f32.vlgmr.msra.gmra.mrb[0].mxu0 %vm377_vm1, %v375_v14  ;;  %s1121_s10 = scalar_lea.vmem %s1120_s18, 256  ;;  %p1122_p2 = scmp.lt.s32.totalorder %s1479_s15, %s1120_s18 }
  0x85   : > { %920 = vmatmul.mubr.msk.f32.vlgmr.msra.gmra.mrb[0].mxu1 %vm377_vm1, %v376_v15  ;;  %930 = vmatprep.mubr.msk.f32.mxu0 %vm1197_vm0, %v1198_v1  ;;  %p1118_p9 = pneg %p1117_p7  ;;  %p1123_p5 = scmp.lt.s32.totalorder %s1121_s10, %s1115_s30 }
  0x86   : > { %935 = vmatprep.mubr.msk.f32.mxu1 %vm1197_vm0, %v1198_v1  ;;  %952 = vmatpush3.bf16.msra.mxu0 %v951_v18 }
  0x87   : > { %953 = vmatprep.subr.bf16.mxu0 %v1196_v0  ;;  %934 = vmatpush3.msra.mxu1 %v625_v30  ;;  %p1124_p1 = por %p1123_p5, %p1122_p2 }
  0x89   : > { %p1125_p6 = pnand %p1124_p1, %p1118_p9 }
  0x8a   : > { %955 = vmatpush3.bf16.msra.mxu0 %v954_v21 }
 0x157   : > { %v447_v22 = vpop.f32.mrb[0].mxu0 }
 0x158   : > { %v520_v24 = vpop.f32.mrb[0].mxu1  ;;  %v910_v25 = vpop.f32.mrb[1].mxu0 }
 0x159   : > { %v521_v26 = vadd.f32 %v520_v24, %v447_v22  ;;  %v921_v27 = vpop.f32.mrb[1].mxu1 }
 0x15b   : > { %v530_v28 = vadd.f32 %v876_v23, %v521_v26 }
 0x15d   : > { %v531_v29 = vmax.f32 %v530_v28, 0.0 }
 0x15f   : > { %931 = vmatmul.mubr.msk.f32.vlgmr.msra.gmra.mrb[2].mxu0 %vm377_vm1, %v531_v29 }
 0x232   : > { %v601_v31 = vpop.f32.mrb[2].mxu0 }
 0x233   : > { %v606_v32 = vsel %vm605_vm2, %v601_v31, -inf  ;;  %v932_v33 = vpop.f32.mrb[3].mxu0 }
 0x234   : > { %v607_v34 = vrot.slane %v606_v32, 4 }
 0x236   : > { %v608_v35 = vmax.f32 %v606_v32, %v607_v34 }
 0x238   : > { %v609_v36 = vrot.slane %v608_v35, 2 }
 0x23a   : > { %v610_v37 = vmax.f32 %v608_v35, %v609_v36 }
 0x23c   : > { %v611_v38 = vrot.slane %v610_v37, 1 }
 0x23e   : > { %v612_v39 = vmax.f32 %v610_v37, %v611_v38 }
 0x240   : > { %v613_v40 = vsub.f32 %v601_v31, %v612_v39 }
 0x242   : > { %v614_v41 = vmul.f32 1.442695, %v613_v40 }
 0x244   : > { %1023 = vpow2.f32 %v614_v41 }
 0x24e   : > { %v1024_v42 = vpop.eup %1023 }
 0x24f   : > { %v616_v43 = vsel %vm605_vm2, %v1024_v42, 0.0 }
 0x250   : > { %v617_v44 = vrot.slane %v616_v43, 4 }
 0x252   : > { %v618_v45 = vadd.f32 %v617_v44, %v616_v43 }
 0x254   : > { %v619_v46 = vrot.slane %v618_v45, 2 }
 0x256   : > { %v620_v47 = vadd.f32 %v619_v46, %v618_v45 }
 0x258   : > { %v621_v48 = vrot.slane %v620_v47, 1 }
 0x25a   : > { %v622_v49 = vadd.f32 %v621_v48, %v620_v47 }
 0x25c   : > { %1025 = vrcp.f32 %v622_v49 }
 0x266   : > { %v1026_v50 = vpop.eup %1025 }
 0x267   : > { %v624_v51 = vmul.f32 %v1026_v50, %v1024_v42 }
 0x269   : > { %626 = vxpose.xlu0.b32.start.end [1/1] (short) (narrow) %v624_v51, 8 }
 0x2e9   : > { %v642_v52 = vpop.trf.xlu0 }
 0x2ea   : > { %936 = vmatmul.mubr.msk.f32.vlgmr.msra.gmra.mrb[2].mxu1 %vm605_vm2, %v642_v52 }
 0x3bd   : > { %v727_v53 = vpop.f32.mrb[2].mxu1 }
 0x3be   : > { %731 = vst.msk [vmem:[%s357_s11] sm:$0xff] %vm377_vm1, %v727_v53  ;;  %v937_v54 = vpop.f32.mrb[3].mxu1 }
 0x3bf   : > { %1128 = shalt.err (!%p1125_p6)
}
 0x3c0   : > { %s1129_s13 = scalar_lea.hbm %s1477_s9, 128  ;;  %s1133_s20 = scalar_lea.hbm %s1529_s7, 256 }
 0x3c1   : > { %p1130_p8 = scmp.ne.s32.totalorder %s1477_s9, %s1129_s13  ;;  %p1134_p11 = scmp.lt.u32.totalorder %s1477_s9, %s1529_s7 }
 0x3c2   : > { %p1135_p0 = scmp.lt.u32.totalorder %s1133_s20, %s1129_s13  ;;  %p1137_p13 = scmp.lt.u32.totalorder %s1129_s13, %s1477_s9 }
 0x3c3   : > { %p1131_p4 = pnand %p1130_p8, %p1553_p3 }
 0x3c4   : > { %p1136_p10 = por %p1135_p0, %p1134_p11 }
 0x3c5   : > { %p1132_p12 = pneg %p1131_p4 }
 0x3c6   : > { %p1138_p7 = por %p1137_p13, %p1136_p10 }
 0x3c8   : > { %p1139_p9 = pnand %p1138_p7, %p1132_p12 }
 0x3ca   : > { %1142 = shalt.err (!%p1139_p9)
}
 0x3cb   : > { %964 = dma.vmem_to_hbm [thread:$0]  (%p1553_p3), %s1479_s15, 128, %s1477_s9, %s733_s29  }
 0x3cc PF: > { %s758_s26 = sand.u32 1, %s1177_s24   ;;  %p1554_p2 = scmp.ne.s32.totalorder %s1540_s8, 0 }
 0x3cd   : > { %p1555_p5 = scmp.ge.s32.totalorder %s1189_s27, 2  ;;  %s759_s22 = scalar_lea.sflag [#allocation4], %s758_s26 }
 0x3cf   : > { %p978_p1 = pnand %p1555_p5, %p1554_p2 }
 0x3d1   : > { %1172 = dma.done.wait (!%p978_p1), %s759_s22, 128  }
 0x3d2   : > { %1174 = vsyncadd (!%p978_p1), %s759_s22, 4294967168  ;;  %s1556_s27 = sld [smem:[#allocation14_spill]]  ;;  %s1557_s17 = sld [smem:[#allocation13_spill]] }
 0x3d3   : > { %s1558_s26 = sld [smem:[#allocation15_spill]]  ;;  %s1559_s24 = smov %s1181_s25 }
 0x3d8   : > { %p23_p6 = scmp.ge.s32.totalorder %s1556_s27, 4   ;;  %s1560_s25 = smov %s1557_s17 }
 0x3da   :  { %25 = sbr.rel (!%p23_p6) target bundleno = 9 (0x9), region = 113 }
 0x3e1   :  { %764 = vsyncpa [#allocation3], 1 }
 0x3e2   :  { %766 = vsyncpa [#allocation3 + $0x1], 1 }
 0x3e3   :  { %767 = vsyncpa [#allocation6], 1 }
 0x3e4   :  { %769 = vsyncpa [#allocation6 + $0x1], 1 }
 0x3e5   :  { %770 = vsyncpa [#allocation4], 1 }
 0x3e6   :  { %772 = vsyncpa [#allocation4 + $0x1], 1 }

</bundles_post_ra>
